<compile_context>
chip_gen: v5e
topology: v5e:2x2
jax: 0.10.0
libtpu: 0.0.40
codegen_flags: <defaults>
</compile_context>

<pallas_src>
import functools

import jax
import jax.numpy as jnp
from jax.experimental import pallas as pl
from jax.experimental.pallas import tpu as pltpu


def _round_up(x, m):
    return ((x + m - 1) // m) * m


def _pad2(a, rows, cols):
    """Zero-pad a 2-D array up to (rows, cols)."""
    return jnp.pad(a, ((0, rows - a.shape[0]), (0, cols - a.shape[1])))


def _pick_tm(m, pac_dim_p, hidden_p, vmem_budget_bytes=24 * 1024 * 1024):
    """Largest multiple-of-8 row tile that keeps tiles + activations within budget."""
    per_row = pac_dim_p * 2 * 2                   # bf16 x tile, double-buffered
    per_row += sum(d * 4 * 2 for d in hidden_p)   # f32 activation temporaries (generous)
    per_row += 4 * 2                              # f32 output tile, double-buffered
    tm = (vmem_budget_bytes // max(per_row, 1)) // 8 * 8
    tm = max(8, min(tm, 2048, _round_up(m, 8)))
    return int(tm)


def _make_critic_kernel(num_hidden_layers: int):
    """Fused MLP kernel: num_hidden x [Linear(bf16 MXU) + LeakyReLU] + final dot-1."""

    def kernel(x_ref, *refs):
        o_ref = refs[-1]
        param_refs = refs[:-1]  # w0,b0, w1,b1, ..., w_last(row), b_last

        h = x_ref[...]  # bf16 (TM, pac_dim_p)
        for i in range(num_hidden_layers):
            w = param_refs[2 * i][...]        # bf16 (in_p, out_p)
            b = param_refs[2 * i + 1][...]    # f32  (1, out_p)
            z = jnp.dot(h, w, preferred_element_type=jnp.float32) + b
            # LeakyReLU(0.2): one vmul + one vmax.
            z = jnp.maximum(z, 0.2 * z)
            # Dropout(0.5): identity in eval mode.
            h = z.astype(jnp.bfloat16)

        # Final Linear(d_last -> 1) as VPU multiply + cross-lane reduce (no N=1 MXU pass).
        w_last = param_refs[2 * num_hidden_layers][...]      # f32 (1, d_last_p)
        b_last = param_refs[2 * num_hidden_layers + 1][...]  # f32 (1, 1)
        hf = h.astype(jnp.float32)
        out = jnp.sum(hf * w_last, axis=-1, keepdims=True) + b_last
        o_ref[...] = out.astype(o_ref.dtype)

    return kernel


def critic_forward(x, params, pac):
    """Apply the Critic to `x` of shape (B, input_dim) with B % pac == 0.

    params: list of (W, b) tuples, W shape (in, out), b shape (1, out).
    Returns array of shape (B // pac, 1), float32.
    """
    B, input_dim = x.shape
    assert B % pac == 0, "batch must be divisible by pac"
    pac_dim = input_dim * pac
    m = B // pac

    # Pack `pac` consecutive rows into one row (same as torch .view(-1, pac_dim)).
    x_packed = x.reshape(m, pac_dim).astype(jnp.float32)

    num_hidden = len(params) - 1

    # Lane-dense (multiple-of-128) feature widths: [pac_dim, d0, d1, ...].
    dims = [pac_dim] + [params[i][0].shape[1] for i in range(num_hidden)]
    dims_p = [_round_up(d, 128) for d in dims]
    pac_dim_p = dims_p[0]
    hidden_p = dims_p[1:]

    # Row tiling over the packed batch.
    TM = _pick_tm(m, pac_dim_p, hidden_p)
    m_pad = _round_up(m, TM)
    grid = (m_pad // TM,)

    # Pad + cast inputs / parameters. Padding columns of W and b are exactly zero,
    # so padded activations stay zero through LeakyReLU and cannot leak.
    x_p = _pad2(x_packed, m_pad, pac_dim_p).astype(jnp.bfloat16)

    flat_params = []
    for i in range(num_hidden):
        w, b = params[i]
        w_p = _pad2(w.astype(jnp.float32), dims_p[i], dims_p[i + 1]).astype(jnp.bfloat16)
        b_p = _pad2(b.reshape(1, -1).astype(jnp.float32), 1, dims_p[i + 1])
        flat_params += [w_p, b_p]
    w_last, b_last = params[-1]
    w_last_p = _pad2(w_last.reshape(1, -1).astype(jnp.float32), 1, dims_p[-1])  # (1, d_last_p)
    b_last_p = b_last.reshape(1, 1).astype(jnp.float32)
    flat_params += [w_last_p, b_last_p]

    kernel = _make_critic_kernel(num_hidden)

    in_specs = [pl.BlockSpec((TM, pac_dim_p), lambda i: (i, 0))]
    for p in flat_params:
        # Weights / biases: full-array blocks, constant index_map -> VMEM-resident.
        in_specs.append(pl.BlockSpec(p.shape, lambda i: (0, 0)))
    out_specs = pl.BlockSpec((TM, 1), lambda i: (i, 0))

    # Advisory cost estimate for XLA scheduling around the custom call.
    flops = 2 * m * sum(int(w.shape[0]) * int(w.shape[1]) for (w, _) in params)
    bytes_accessed = int(x_p.size) * 2 + sum(
        int(p.size) * p.dtype.itemsize for p in flat_params
    ) + m_pad * 4
    cost = pl.CostEstimate(flops=flops, transcendentals=0, bytes_accessed=bytes_accessed)

    out = pl.pallas_call(
        kernel,
        out_shape=jax.ShapeDtypeStruct((m_pad, 1), jnp.float32),
        grid=grid,
        in_specs=in_specs,
        out_specs=out_specs,
        compiler_params=pltpu.CompilerParams(
            dimension_semantics=("parallel",),
            vmem_limit_bytes=48 * 1024 * 1024,
        ),
        cost_estimate=cost,
    )(x_p, *flat_params)

    return out[:m]


def init_critic_params(key, input_dim, discriminator_dim, pac):
    """Deterministic init mimicking PyTorch nn.Linear default (uniform +/-1/sqrt(fan_in))."""
    dims_in = []
    dims_out = []
    dim = input_dim * pac
    for item in discriminator_dim:
        dims_in.append(dim)
        dims_out.append(item)
        dim = item
    dims_in.append(dim)
    dims_out.append(1)

    params = []
    for d_in, d_out in zip(dims_in, dims_out):
        key, kw, kb = jax.random.split(key, 3)
        bound = 1.0 / jnp.sqrt(jnp.float32(d_in))
        w = jax.random.uniform(kw, (d_in, d_out), jnp.float32, -bound, bound)
        b = jax.random.uniform(kb, (1, d_out), jnp.float32, -bound, bound)
        params.append((w, b))
    return params


def critic_reference_f32(x, params, pac):
    """Pure-JAX float32 reference (matches PyTorch eval-mode forward)."""
    B, input_dim = x.shape
    h = x.reshape(B // pac, input_dim * pac)
    for i, (w, b) in enumerate(params):
        h = h @ w + b
        if i < len(params) - 1:
            h = jnp.where(h >= 0.0, h, 0.2 * h)
    return h


def critic_reference_matched(x, params, pac):
    """Pure-JAX reference using the same bf16-weight / f32-accumulate numerics as the kernel."""
    B, input_dim = x.shape
    h = x.reshape(B // pac, input_dim * pac).astype(jnp.bfloat16)
    for w, b in params[:-1]:
        z = jnp.dot(h, w.astype(jnp.bfloat16), preferred_element_type=jnp.float32) + b
        z = jnp.maximum(z, 0.2 * z)
        h = z.astype(jnp.bfloat16)
    w_last, b_last = params[-1]
    hf = h.astype(jnp.float32)
    return jnp.sum(hf * w_last.reshape(1, -1), axis=-1, keepdims=True) + b_last.reshape(1, 1)


if __name__ == "__main__":
    # Small, module-consistent shapes: input_dim=4, pac=10 -> pac_dim=40, batch=20.
    input_dim = 4
    pac = 10
    batch = 2 * pac  # 20 rows -> 2 packed rows
    discriminator_dim = (32, 16)

    key = jax.random.PRNGKey(0)
    key_x, key_p = jax.random.split(key)
    x = jax.random.normal(key_x, (batch, input_dim), dtype=jnp.float32)
    params = init_critic_params(key_p, input_dim, discriminator_dim, pac)

    run = jax.jit(functools.partial(critic_forward, pac=pac))
    out = run(x, params)
    out = jax.block_until_ready(out)

    ref_matched = critic_reference_matched(x, params, pac)
    ref_f32 = critic_reference_f32(x, params, pac)

    assert out.shape == (batch // pac, 1), out.shape
    # Tight check against a reference using identical bf16/f32 numerics.
    assert jnp.allclose(out, ref_matched, atol=1e-3, rtol=1e-3), (out, ref_matched)
    # Loose check against the pure-f32 PyTorch-semantics reference (bf16 rounding only).
    assert jnp.allclose(out, ref_f32, atol=5e-2, rtol=5e-2), (out, ref_f32)

    print("KERNEL_OK")
</pallas_src>

<mosaic_0001>
module attributes {stable_mosaic.version = 11 : i64} {
  func.func @kernel(%arg0: i32, %arg1: memref<8x128xbf16, #tpu.memory_space<vmem>>, %arg2: memref<128x128xbf16, #tpu.memory_space<vmem>>, %arg3: memref<1x128xf32, #tpu.memory_space<vmem>>, %arg4: memref<128x128xbf16, #tpu.memory_space<vmem>>, %arg5: memref<1x128xf32, #tpu.memory_space<vmem>>, %arg6: memref<1x128xf32, #tpu.memory_space<vmem>>, %arg7: memref<1x1xf32, #tpu.memory_space<vmem>>, %arg8: memref<8x1xf32, #tpu.memory_space<vmem>>) attributes {dimension_semantics = [#tpu.dimension_semantics<parallel>], iteration_bounds = array<i64: 1>, scalar_prefetch = 0 : i64, scratch_operands = 0 : i64, tpu.core_type = #tpu.core_type<tc>, window_params = [{transform_indices = @transform_0, window_bounds = array<i64: 8, 128>}, {pipeline_mode = #tpu.pipeline_mode<synchronous>, transform_indices = @transform_1, window_bounds = array<i64: 128, 128>}, {pipeline_mode = #tpu.pipeline_mode<synchronous>, transform_indices = @transform_2, window_bounds = array<i64: 1, 128>}, {pipeline_mode = #tpu.pipeline_mode<synchronous>, transform_indices = @transform_3, window_bounds = array<i64: 128, 128>}, {pipeline_mode = #tpu.pipeline_mode<synchronous>, transform_indices = @transform_4, window_bounds = array<i64: 1, 128>}, {pipeline_mode = #tpu.pipeline_mode<synchronous>, transform_indices = @transform_5, window_bounds = array<i64: 1, 128>}, {pipeline_mode = #tpu.pipeline_mode<synchronous>, transform_indices = @transform_6, window_bounds = array<i64: 1, 1>}, {transform_indices = @transform_7, window_bounds = array<i64: 8, 1>}]} {
    %c0 = arith.constant 0 : index
    %c0_0 = arith.constant 0 : index
    %0 = vector.load %arg1[%c0, %c0_0] : memref<8x128xbf16, #tpu.memory_space<vmem>>, vector<8x128xbf16>
    %c0_1 = arith.constant 0 : index
    %c0_2 = arith.constant 0 : index
    %1 = vector.load %arg2[%c0_1, %c0_2] : memref<128x128xbf16, #tpu.memory_space<vmem>>, vector<128x128xbf16>
    %c0_3 = arith.constant 0 : index
    %c0_4 = arith.constant 0 : index
    %2 = vector.load %arg3[%c0_3, %c0_4] : memref<1x128xf32, #tpu.memory_space<vmem>>, vector<1x128xf32>
    %cst = arith.constant dense<0.000000e+00> : vector<8x128xf32>
    %3 = tpu.matmul %0, %1, %cst {dimension_numbers = #tpu.dot_dimension_numbers<[1], [0], [0], [1], [0, 0, 1, 1], [], []>} : vector<8x128xbf16>, vector<128x128xbf16>, vector<8x128xf32> -> vector<8x128xf32>
    %4 = vector.broadcast %2 : vector<1x128xf32> to vector<8x128xf32>
    %5 = arith.addf %3, %4 : vector<8x128xf32>
    %cst_5 = arith.constant 2.000000e-01 : f32
    %6 = vector.broadcast %cst_5 : f32 to vector<8x128xf32>
    %7 = arith.mulf %6, %5 : vector<8x128xf32>
    %8 = arith.maximumf %5, %7 : vector<8x128xf32>
    %9 = arith.truncf %8 : vector<8x128xf32> to vector<8x128xbf16>
    %c0_6 = arith.constant 0 : index
    %c0_7 = arith.constant 0 : index
    %10 = vector.load %arg4[%c0_6, %c0_7] : memref<128x128xbf16, #tpu.memory_space<vmem>>, vector<128x128xbf16>
    %c0_8 = arith.constant 0 : index
    %c0_9 = arith.constant 0 : index
    %11 = vector.load %arg5[%c0_8, %c0_9] : memref<1x128xf32, #tpu.memory_space<vmem>>, vector<1x128xf32>
    %cst_10 = arith.constant dense<0.000000e+00> : vector<8x128xf32>
    %12 = tpu.matmul %9, %10, %cst_10 {dimension_numbers = #tpu.dot_dimension_numbers<[1], [0], [0], [1], [0, 0, 1, 1], [], []>} : vector<8x128xbf16>, vector<128x128xbf16>, vector<8x128xf32> -> vector<8x128xf32>
    %13 = vector.broadcast %11 : vector<1x128xf32> to vector<8x128xf32>
    %14 = arith.addf %12, %13 : vector<8x128xf32>
    %cst_11 = arith.constant 2.000000e-01 : f32
    %15 = vector.broadcast %cst_11 : f32 to vector<8x128xf32>
    %16 = arith.mulf %15, %14 : vector<8x128xf32>
    %17 = arith.maximumf %14, %16 : vector<8x128xf32>
    %18 = arith.truncf %17 : vector<8x128xf32> to vector<8x128xbf16>
    %c0_12 = arith.constant 0 : index
    %c0_13 = arith.constant 0 : index
    %19 = vector.load %arg6[%c0_12, %c0_13] : memref<1x128xf32, #tpu.memory_space<vmem>>, vector<1x128xf32>
    %c0_14 = arith.constant 0 : index
    %c0_15 = arith.constant 0 : index
    %20 = vector.load %arg7[%c0_14, %c0_15] : memref<1x1xf32, #tpu.memory_space<vmem>>, vector<1x1xf32>
    %21 = arith.extf %18 : vector<8x128xbf16> to vector<8x128xf32>
    %22 = vector.broadcast %19 : vector<1x128xf32> to vector<8x128xf32>
    %23 = arith.mulf %21, %22 : vector<8x128xf32>
    %cst_16 = arith.constant dense<0.000000e+00> : vector<8xf32>
    %24 = vector.multi_reduction <add>, %23, %cst_16 [1] : vector<8x128xf32> to vector<8xf32>
    %25 = vector.shape_cast %24 : vector<8xf32> to vector<8x1xf32>
    %26 = vector.broadcast %20 : vector<1x1xf32> to vector<8x1xf32>
    %27 = arith.addf %25, %26 : vector<8x1xf32>
    %c0_17 = arith.constant 0 : index
    %c0_18 = arith.constant 0 : index
    %28 = vector.load %arg8[%c0_17, %c0_18] : memref<8x1xf32, #tpu.memory_space<vmem>>, vector<8x1xf32>
    tpu.vector_store %arg8[%c0_17, %c0_18], %27 {strides = array<i32>} : memref<8x1xf32, #tpu.memory_space<vmem>>, vector<8x1xf32>,
    return
  }
  func.func @transform_0(%arg0: i32) -> (i32, i32) {
    %c0_i32 = arith.constant 0 : i32
    %c0_i32_0 = arith.constant 0 : i32
    return %arg0, %c0_i32 : i32, i32
  }
  func.func @transform_1(%arg0: i32) -> (i32, i32) {
    %c0_i32 = arith.constant 0 : i32
    %c0_i32_0 = arith.constant 0 : i32
    %c0_i32_1 = arith.constant 0 : i32
    return %c0_i32, %c0_i32_0 : i32, i32
  }
  func.func @transform_2(%arg0: i32) -> (i32, i32) {
    %c0_i32 = arith.constant 0 : i32
    %c0_i32_0 = arith.constant 0 : i32
    %c0_i32_1 = arith.constant 0 : i32
    return %c0_i32, %c0_i32_0 : i32, i32
  }
  func.func @transform_3(%arg0: i32) -> (i32, i32) {
    %c0_i32 = arith.constant 0 : i32
    %c0_i32_0 = arith.constant 0 : i32
    %c0_i32_1 = arith.constant 0 : i32
    return %c0_i32, %c0_i32_0 : i32, i32
  }
  func.func @transform_4(%arg0: i32) -> (i32, i32) {
    %c0_i32 = arith.constant 0 : i32
    %c0_i32_0 = arith.constant 0 : i32
    %c0_i32_1 = arith.constant 0 : i32
    return %c0_i32, %c0_i32_0 : i32, i32
  }
  func.func @transform_5(%arg0: i32) -> (i32, i32) {
    %c0_i32 = arith.constant 0 : i32
    %c0_i32_0 = arith.constant 0 : i32
    %c0_i32_1 = arith.constant 0 : i32
    return %c0_i32, %c0_i32_0 : i32, i32
  }
  func.func @transform_6(%arg0: i32) -> (i32, i32) {
    %c0_i32 = arith.constant 0 : i32
    %c0_i32_0 = arith.constant 0 : i32
    %c0_i32_1 = arith.constant 0 : i32
    return %c0_i32, %c0_i32_0 : i32, i32
  }
  func.func @transform_7(%arg0: i32) -> (i32, i32) {
    %c0_i32 = arith.constant 0 : i32
    %c0_i32_0 = arith.constant 0 : i32
    return %arg0, %c0_i32 : i32, i32
  }
}

</mosaic_0001>

<bundles_post_ra>
// kernel: critic_forward.1
= control target key start
LH: loop header
LB: loop body
LE: loop exit
PB: predicated region body
PF: predicated region fallthrough
CT: control target
= control target key end

     0   :  { %vm210_vm0 = vcmask 7168   ;;  %s406_s1 = inlined_call_operand.vmem [shape: bf16[128,128], index: 1, kind: input, shape index: {}]   ;;  %s407_s3 = inlined_call_operand.vmem [shape: bf16[128,128], index: 3, kind: input, shape index: {}]   ;;  %s408_s2 = inlined_call_operand.vmem [shape: f32[1,128], index: 2, kind: input, shape index: {}]   ;;  %s409_s0 = inlined_call_operand.vmem [shape: bf16[8,128], index: 0, kind: input, shape index: {}]   ;;  %s410_s4 = inlined_call_operand.vmem [shape: f32[1,128], index: 4, kind: input, shape index: {}]   ;;  %s411_s5 = inlined_call_operand.vmem [shape: f32[1,128], index: 5, kind: input, shape index: {}]   ;;  %s412_s6 = inlined_call_operand.<no memory space> [shape: f32[1,1], index: 6, kind: input, shape index: {}]   ;;  %s413_s7 = inlined_call_operand.vmem [shape: f32[8,1], index: 7, kind: output, shape index: {}]  }
   0x1   :  { %v287_v0 = vld [vmem:[%s406_s1 + $0x38] sm:$0xff]  ;;  %v286_v1 = vld [vmem:[%s406_s1 + $0x30] sm:$0xff]  ;;  %v285_v4 = vld [vmem:[%s406_s1 + $0x28] sm:$0xff]  ;;  %v12_v24 = vstv %s412_s6 }
   0x2   :  { %97 = vmatpush.bf16.msra.mxu0 %v287_v0  ;;  %v295_v2 = vld [vmem:[%s407_s3 + $0x38] sm:$0xff]  ;;  %v294_v3 = vld [vmem:[%s407_s3 + $0x30] sm:$0xff]  ;;  %v293_v5 = vld [vmem:[%s407_s3 + $0x28] sm:$0xff]  ;;  %13 = vst [vmem:[#allocation2] sm:$0x1] %v12_v24 }
   0x3   :  { %181 = vmatpush.bf16.msra.mxu1 %v295_v2  ;;  %v284_v6 = vld [vmem:[%s406_s1 + $0x20] sm:$0xff]  ;;  %v283_v8 = vld [vmem:[%s406_s1 + $0x18] sm:$0xff]  ;;  %v282_v10 = vld [vmem:[%s406_s1 + $0x10] sm:$0xff] }
   0x4   :  { %v292_v7 = vld [vmem:[%s407_s3 + $0x20] sm:$0xff]  ;;  %v291_v9 = vld [vmem:[%s407_s3 + $0x18] sm:$0xff]  ;;  %v290_v11 = vld [vmem:[%s407_s3 + $0x10] sm:$0xff] }
   0x5   :  { %v281_v12 = vld [vmem:[%s406_s1 + $0x8] sm:$0xff]  ;;  %v280_v13 = vld [vmem:[%s406_s1] sm:$0xff] }
   0x6   :  { %98 = vmatpush.bf16.msra.mxu0 %v286_v1  ;;  %v28_v14 = vld [vmem:[%s409_s0] sm:$0xf]  ;;  %v289_v15 = vld [vmem:[%s407_s3 + $0x8] sm:$0xff] }
   0x7   :  { %182 = vmatpush.bf16.msra.mxu1 %v294_v3  ;;  %v288_v16 = vld [vmem:[%s407_s3] sm:$0xff] }
   0x8   :  { %v296_v17 = vld [vmem:[%s408_s2] ss:$0 sm:$0xff] }
   0x9   :  { %v297_v25 = vld [vmem:[%s410_s4] ss:$0 sm:$0xff] }
   0xa   :  { %99 = vmatpush.bf16.msra.mxu0 %v285_v4  ;;  %v298_v31 = vld [vmem:[%s411_s5] ss:$0 sm:$0xff] }
   0xb   :  { %183 = vmatpush.bf16.msra.mxu1 %v293_v5  ;;  %v299_v35 = vld [vmem:[#allocation2] ss:$0 sm:$0xff] }
   0xe   :  { %100 = vmatpush.bf16.msra.mxu0 %v284_v6 }
   0xf   :  { %184 = vmatpush.bf16.msra.mxu1 %v292_v7 }
  0x12   :  { %101 = vmatpush.bf16.msra.mxu0 %v283_v8 }
  0x13   :  { %185 = vmatpush.bf16.msra.mxu1 %v291_v9 }
  0x16   :  { %102 = vmatpush.bf16.msra.mxu0 %v282_v10 }
  0x17   :  { %186 = vmatpush.bf16.msra.mxu1 %v290_v11 }
  0x1a   :  { %103 = vmatpush.bf16.msra.mxu0 %v281_v12 }
  0x1b   :  { %187 = vmatpush.bf16.msra.mxu1 %v289_v15 }
  0x1e   :  { %104 = vmatpush.bf16.msra.mxu0 %v280_v13 }
  0x1f   :  { %188 = vmatpush.bf16.msra.mxu1 %v288_v16 }
  0x21   :  { %105 = vmatmul.bf16.vlgmr.msra.gmra.mxu0 %v28_v14 }
  0x9e   :  { %v106_v18 = vpop.f32.mrf.mxu0 }
  0x9f   :  { %v107_v19 = vadd.f32 %v296_v17, %v106_v18 }
  0xa1   :  { %v110_v20 = vmul.f32 0.2, %v107_v19 }
  0xa3   :  { %v111_v21 = vmax.f32 %v107_v19, %v110_v20 }
  0xa5   :  { %v112_v22 = vpack.c.bf16 %v111_v21, %v111_v21 }
  0xa6   :  { %v108_v23 = vpop.f32.mrf.mxu0 }
  0xa7   :  { %189 = vmatmul.bf16.vlgmr.msra.gmra.mxu1 %v112_v22 }
 0x124   :  { %v190_v26 = vpop.f32.mrf.mxu1 }
 0x125   :  { %v191_v27 = vadd.f32 %v297_v25, %v190_v26 }
 0x127   :  { %v194_v28 = vmul.f32 0.2, %v191_v27 }
 0x129   :  { %v195_v29 = vmax.f32 %v191_v27, %v194_v28 }
 0x12b   :  { %v196_v30 = vpack.c.bf16 %v195_v29, %v195_v29 }
 0x12c   :  { %v192_v32 = vpop.f32.mrf.mxu1 }
 0x12d   :  { %v199_v33 = vunpack.c.l.bf16 %v196_v30 }
 0x12f   :  { %v203_v34 = vmul.f32 %v298_v31, %v199_v33 }
 0x131   :  { %204 = vadd.xlane.f32.xlu0 %v203_v34 }
 0x1a4   :  { %v205_v36 = vpop.xlane.xlu0 %204 }
 0x1a5   :  { %v209_v37 = vadd.f32 %v299_v35, %v205_v36 }
 0x1a7   :  { %211 = vst.msk [vmem:[%s413_s7] sm:$0xff] %vm210_vm0, %v209_v37 }

</bundles_post_ra>
